<compile_context>
chip_gen: v5e
topology: v5e:2x2
jax: 0.10.0
libtpu: 0.0.40
codegen_flags: <defaults>
</compile_context>

<pallas_src>
import functools

import numpy as np
import jax
import jax.numpy as jnp
from jax.experimental import pallas as pl
from jax.experimental.pallas import tpu as pltpu


def _std_kernel(x_ref, g_ref, k_ref, o_ref, *, s):
    """Space-to-depth for one (b, c) plane.

    x_ref: (H, W)          input plane (dense VMEM tile)
    g_ref: (s, Ho, H)      one-hot row selectors:  g[sh] @ x == x[sh::s, :]
    k_ref: (s, W, Wo)      one-hot col selectors:  t @ k[sw] == t[:, sw::s]
    o_ref: (s, s, Ho, Wo)  output block; o[sh, sw] == x[sh::s, sw::s]
    """
    x = x_ref[...].astype(jnp.float32)
    for sh in range(s):                                        # static unroll
        rows = jnp.dot(g_ref[sh], x,
                       preferred_element_type=jnp.float32)     # (Ho, W)
        for sw in range(s):                                    # static unroll
            tap = jnp.dot(rows, k_ref[sw],
                          preferred_element_type=jnp.float32)  # (Ho, Wo)
            o_ref[sh, sw, :, :] = tap.astype(o_ref.dtype)


def _selection_mats(H, W, s):
    """Constant one-hot matrices implementing the stride-s de-interleave."""
    Ho, Wo = H // s, W // s
    g = np.zeros((s, Ho, H), np.float32)
    k = np.zeros((s, W, Wo), np.float32)
    for j in range(s):
        g[j, np.arange(Ho), np.arange(Ho) * s + j] = 1.0
        k[j, np.arange(Wo) * s + j, np.arange(Wo)] = 1.0
    return jnp.asarray(g), jnp.asarray(k)


def std_pallas(x, scale):
    B, C, H, W = x.shape
    s = int(scale)
    assert H % s == 0 and W % s == 0, (H, W, s)
    Ho, Wo = H // s, W // s
    g, k = _selection_mats(H, W, s)

    out6 = pl.pallas_call(
        functools.partial(_std_kernel, s=s),
        out_shape=jax.ShapeDtypeStruct((B, C, s, s, Ho, Wo), x.dtype),
        grid=(B, C),
        in_specs=[
            # One (H, W) plane per grid step; contiguous HBM read, read once.
            pl.BlockSpec((None, None, H, W), lambda b, c: (b, c, 0, 0)),
            # Selector matrices: same block every step -> fetched once.
            pl.BlockSpec((s, Ho, H), lambda b, c: (0, 0, 0)),
            pl.BlockSpec((s, W, Wo), lambda b, c: (0, 0, 0)),
        ],
        # Output viewed as (B, C, s, s, Ho, Wo); contiguous HBM write, written once.
        out_specs=pl.BlockSpec((None, None, s, s, Ho, Wo),
                               lambda b, c: (b, c, 0, 0, 0, 0)),
        compiler_params=pltpu.CompilerParams(
            dimension_semantics=("parallel", "parallel")),
    )(x, g, k)
    # Free, contiguous merge of the (C, s, s) channel factors.
    return out6.reshape(B, C * s * s, Ho, Wo)


def std_ref(x, scale):
    """Pure-JAX reference replicating the PyTorch view/permute/view exactly."""
    B, C, H, W = x.shape
    s = scale
    y = x.reshape(B, C, H // s, s, W // s, s)
    y = jnp.transpose(y, (0, 1, 3, 5, 2, 4))
    return y.reshape(B, C * s * s, H // s, W // s)


if __name__ == "__main__":
    B, C, H, W, scale = 2, 4, 16, 16, 4
    x = jax.random.normal(jax.random.PRNGKey(0), (B, C, H, W), jnp.float32)

    fwd = jax.jit(functools.partial(std_pallas, scale=scale))
    out = jax.block_until_ready(fwd(x))
    ref = std_ref(x, scale)

    assert out.shape == (B, C * scale ** 2, H // scale, W // scale), out.shape
    assert bool(jnp.all(jnp.isfinite(out)))
    err = float(jnp.max(jnp.abs(out - ref)))
    assert np.allclose(np.asarray(out), np.asarray(ref),
                       rtol=1e-2, atol=1e-2), err
    print("KERNEL_OK")
</pallas_src>

<mosaic_0001>
module attributes {stable_mosaic.version = 11 : i64} {
  func.func @_std_kernel(%arg0: i32, %arg1: i32, %arg2: memref<1x1x16x16xf32, #tpu.memory_space<vmem>>, %arg3: memref<4x4x16xf32, #tpu.memory_space<vmem>>, %arg4: memref<4x16x4xf32, #tpu.memory_space<vmem>>, %arg5: memref<1x1x4x4x4x4xf32, #tpu.memory_space<vmem>>) attributes {dimension_semantics = [#tpu.dimension_semantics<parallel>, #tpu.dimension_semantics<parallel>], iteration_bounds = array<i64: 2, 4>, scalar_prefetch = 0 : i64, scratch_operands = 0 : i64, tpu.core_type = #tpu.core_type<tc>, window_params = [{transform_indices = @transform_0, window_bounds = array<i64: 1, 1, 16, 16>}, {pipeline_mode = #tpu.pipeline_mode<synchronous>, transform_indices = @transform_1, window_bounds = array<i64: 4, 4, 16>}, {pipeline_mode = #tpu.pipeline_mode<synchronous>, transform_indices = @transform_2, window_bounds = array<i64: 4, 16, 4>}, {transform_indices = @transform_3, window_bounds = array<i64: 1, 1, 4, 4, 4, 4>}]} {
    %c0 = arith.constant 0 : index
    %c0_0 = arith.constant 0 : index
    %c0_1 = arith.constant 0 : index
    %c0_2 = arith.constant 0 : index
    %0 = vector.load %arg2[%c0, %c0_0, %c0_1, %c0_2] : memref<1x1x16x16xf32, #tpu.memory_space<vmem>>, vector<1x1x16x16xf32>
    %1 = vector.shape_cast %0 : vector<1x1x16x16xf32> to vector<16x16xf32>
    %c0_3 = arith.constant 0 : index
    %c0_4 = arith.constant 0 : index
    %c0_5 = arith.constant 0 : index
    %2 = vector.load %arg3[%c0_3, %c0_4, %c0_5] : memref<4x4x16xf32, #tpu.memory_space<vmem>>, vector<1x4x16xf32>
    %3 = vector.shape_cast %2 : vector<1x4x16xf32> to vector<4x16xf32>
    %cst = arith.constant dense<0.000000e+00> : vector<4x16xf32>
    %4 = tpu.matmul %3, %1, %cst {dimension_numbers = #tpu.dot_dimension_numbers<[1], [0], [0], [1], [0, 0, 1, 1], [], []>} : vector<4x16xf32>, vector<16x16xf32>, vector<4x16xf32> -> vector<4x16xf32>
    %c0_6 = arith.constant 0 : index
    %c0_7 = arith.constant 0 : index
    %c0_8 = arith.constant 0 : index
    %5 = vector.load %arg4[%c0_6, %c0_7, %c0_8] : memref<4x16x4xf32, #tpu.memory_space<vmem>>, vector<1x16x4xf32>
    %6 = vector.shape_cast %5 : vector<1x16x4xf32> to vector<16x4xf32>
    %cst_9 = arith.constant dense<0.000000e+00> : vector<4x4xf32>
    %7 = tpu.matmul %4, %6, %cst_9 {dimension_numbers = #tpu.dot_dimension_numbers<[1], [0], [0], [1], [0, 0, 1, 1], [], []>} : vector<4x16xf32>, vector<16x4xf32>, vector<4x4xf32> -> vector<4x4xf32>
    %c0_10 = arith.constant 0 : index
    %c0_11 = arith.constant 0 : index
    %c0_12 = arith.constant 0 : index
    %c0_13 = arith.constant 0 : index
    %c0_14 = arith.constant 0 : index
    %c0_15 = arith.constant 0 : index
    %8 = vector.load %arg5[%c0_10, %c0_11, %c0_12, %c0_13, %c0_14, %c0_15] : memref<1x1x4x4x4x4xf32, #tpu.memory_space<vmem>>, vector<1x1x1x1x4x4xf32>
    %9 = vector.shape_cast %8 : vector<1x1x1x1x4x4xf32> to vector<4x4xf32>
    %10 = vector.shape_cast %7 : vector<4x4xf32> to vector<1x1x1x1x4x4xf32>
    tpu.vector_store %arg5[%c0_10, %c0_11, %c0_12, %c0_13, %c0_14, %c0_15], %10 {strides = array<i32>} : memref<1x1x4x4x4x4xf32, #tpu.memory_space<vmem>>, vector<1x1x1x1x4x4xf32>,
    %c1 = arith.constant 1 : index
    %c0_16 = arith.constant 0 : index
    %c0_17 = arith.constant 0 : index
    %11 = vector.load %arg4[%c1, %c0_16, %c0_17] : memref<4x16x4xf32, #tpu.memory_space<vmem>>, vector<1x16x4xf32>
    %12 = vector.shape_cast %11 : vector<1x16x4xf32> to vector<16x4xf32>
    %cst_18 = arith.constant dense<0.000000e+00> : vector<4x4xf32>
    %13 = tpu.matmul %4, %12, %cst_18 {dimension_numbers = #tpu.dot_dimension_numbers<[1], [0], [0], [1], [0, 0, 1, 1], [], []>} : vector<4x16xf32>, vector<16x4xf32>, vector<4x4xf32> -> vector<4x4xf32>
    %c0_19 = arith.constant 0 : index
    %c0_20 = arith.constant 0 : index
    %c0_21 = arith.constant 0 : index
    %c1_22 = arith.constant 1 : index
    %c0_23 = arith.constant 0 : index
    %c0_24 = arith.constant 0 : index
    %14 = vector.load %arg5[%c0_19, %c0_20, %c0_21, %c1_22, %c0_23, %c0_24] : memref<1x1x4x4x4x4xf32, #tpu.memory_space<vmem>>, vector<1x1x1x1x4x4xf32>
    %15 = vector.shape_cast %14 : vector<1x1x1x1x4x4xf32> to vector<4x4xf32>
    %16 = vector.shape_cast %13 : vector<4x4xf32> to vector<1x1x1x1x4x4xf32>
    tpu.vector_store %arg5[%c0_19, %c0_20, %c0_21, %c1_22, %c0_23, %c0_24], %16 {strides = array<i32>} : memref<1x1x4x4x4x4xf32, #tpu.memory_space<vmem>>, vector<1x1x1x1x4x4xf32>,
    %c2 = arith.constant 2 : index
    %c0_25 = arith.constant 0 : index
    %c0_26 = arith.constant 0 : index
    %17 = vector.load %arg4[%c2, %c0_25, %c0_26] : memref<4x16x4xf32, #tpu.memory_space<vmem>>, vector<1x16x4xf32>
    %18 = vector.shape_cast %17 : vector<1x16x4xf32> to vector<16x4xf32>
    %cst_27 = arith.constant dense<0.000000e+00> : vector<4x4xf32>
    %19 = tpu.matmul %4, %18, %cst_27 {dimension_numbers = #tpu.dot_dimension_numbers<[1], [0], [0], [1], [0, 0, 1, 1], [], []>} : vector<4x16xf32>, vector<16x4xf32>, vector<4x4xf32> -> vector<4x4xf32>
    %c0_28 = arith.constant 0 : index
    %c0_29 = arith.constant 0 : index
    %c0_30 = arith.constant 0 : index
    %c2_31 = arith.constant 2 : index
    %c0_32 = arith.constant 0 : index
    %c0_33 = arith.constant 0 : index
    %20 = vector.load %arg5[%c0_28, %c0_29, %c0_30, %c2_31, %c0_32, %c0_33] : memref<1x1x4x4x4x4xf32, #tpu.memory_space<vmem>>, vector<1x1x1x1x4x4xf32>
    %21 = vector.shape_cast %20 : vector<1x1x1x1x4x4xf32> to vector<4x4xf32>
    %22 = vector.shape_cast %19 : vector<4x4xf32> to vector<1x1x1x1x4x4xf32>
    tpu.vector_store %arg5[%c0_28, %c0_29, %c0_30, %c2_31, %c0_32, %c0_33], %22 {strides = array<i32>} : memref<1x1x4x4x4x4xf32, #tpu.memory_space<vmem>>, vector<1x1x1x1x4x4xf32>,
    %c3 = arith.constant 3 : index
    %c0_34 = arith.constant 0 : index
    %c0_35 = arith.constant 0 : index
    %23 = vector.load %arg4[%c3, %c0_34, %c0_35] : memref<4x16x4xf32, #tpu.memory_space<vmem>>, vector<1x16x4xf32>
    %24 = vector.shape_cast %23 : vector<1x16x4xf32> to vector<16x4xf32>
    %cst_36 = arith.constant dense<0.000000e+00> : vector<4x4xf32>
    %25 = tpu.matmul %4, %24, %cst_36 {dimension_numbers = #tpu.dot_dimension_numbers<[1], [0], [0], [1], [0, 0, 1, 1], [], []>} : vector<4x16xf32>, vector<16x4xf32>, vector<4x4xf32> -> vector<4x4xf32>
    %c0_37 = arith.constant 0 : index
    %c0_38 = arith.constant 0 : index
    %c0_39 = arith.constant 0 : index
    %c3_40 = arith.constant 3 : index
    %c0_41 = arith.constant 0 : index
    %c0_42 = arith.constant 0 : index
    %26 = vector.load %arg5[%c0_37, %c0_38, %c0_39, %c3_40, %c0_41, %c0_42] : memref<1x1x4x4x4x4xf32, #tpu.memory_space<vmem>>, vector<1x1x1x1x4x4xf32>
    %27 = vector.shape_cast %26 : vector<1x1x1x1x4x4xf32> to vector<4x4xf32>
    %28 = vector.shape_cast %25 : vector<4x4xf32> to vector<1x1x1x1x4x4xf32>
    tpu.vector_store %arg5[%c0_37, %c0_38, %c0_39, %c3_40, %c0_41, %c0_42], %28 {strides = array<i32>} : memref<1x1x4x4x4x4xf32, #tpu.memory_space<vmem>>, vector<1x1x1x1x4x4xf32>,
    %c1_43 = arith.constant 1 : index
    %c0_44 = arith.constant 0 : index
    %c0_45 = arith.constant 0 : index
    %29 = vector.load %arg3[%c1_43, %c0_44, %c0_45] : memref<4x4x16xf32, #tpu.memory_space<vmem>>, vector<1x4x16xf32>
    %30 = vector.shape_cast %29 : vector<1x4x16xf32> to vector<4x16xf32>
    %cst_46 = arith.constant dense<0.000000e+00> : vector<4x16xf32>
    %31 = tpu.matmul %30, %1, %cst_46 {dimension_numbers = #tpu.dot_dimension_numbers<[1], [0], [0], [1], [0, 0, 1, 1], [], []>} : vector<4x16xf32>, vector<16x16xf32>, vector<4x16xf32> -> vector<4x16xf32>
    %c0_47 = arith.constant 0 : index
    %c0_48 = arith.constant 0 : index
    %c0_49 = arith.constant 0 : index
    %32 = vector.load %arg4[%c0_47, %c0_48, %c0_49] : memref<4x16x4xf32, #tpu.memory_space<vmem>>, vector<1x16x4xf32>
    %33 = vector.shape_cast %32 : vector<1x16x4xf32> to vector<16x4xf32>
    %cst_50 = arith.constant dense<0.000000e+00> : vector<4x4xf32>
    %34 = tpu.matmul %31, %33, %cst_50 {dimension_numbers = #tpu.dot_dimension_numbers<[1], [0], [0], [1], [0, 0, 1, 1], [], []>} : vector<4x16xf32>, vector<16x4xf32>, vector<4x4xf32> -> vector<4x4xf32>
    %c0_51 = arith.constant 0 : index
    %c0_52 = arith.constant 0 : index
    %c1_53 = arith.constant 1 : index
    %c0_54 = arith.constant 0 : index
    %c0_55 = arith.constant 0 : index
    %c0_56 = arith.constant 0 : index
    %35 = vector.load %arg5[%c0_51, %c0_52, %c1_53, %c0_54, %c0_55, %c0_56] : memref<1x1x4x4x4x4xf32, #tpu.memory_space<vmem>>, vector<1x1x1x1x4x4xf32>
    %36 = vector.shape_cast %35 : vector<1x1x1x1x4x4xf32> to vector<4x4xf32>
    %37 = vector.shape_cast %34 : vector<4x4xf32> to vector<1x1x1x1x4x4xf32>
    tpu.vector_store %arg5[%c0_51, %c0_52, %c1_53, %c0_54, %c0_55, %c0_56], %37 {strides = array<i32>} : memref<1x1x4x4x4x4xf32, #tpu.memory_space<vmem>>, vector<1x1x1x1x4x4xf32>,
    %c1_57 = arith.constant 1 : index
    %c0_58 = arith.constant 0 : index
    %c0_59 = arith.constant 0 : index
    %38 = vector.load %arg4[%c1_57, %c0_58, %c0_59] : memref<4x16x4xf32, #tpu.memory_space<vmem>>, vector<1x16x4xf32>
    %39 = vector.shape_cast %38 : vector<1x16x4xf32> to vector<16x4xf32>
    %cst_60 = arith.constant dense<0.000000e+00> : vector<4x4xf32>
    %40 = tpu.matmul %31, %39, %cst_60 {dimension_numbers = #tpu.dot_dimension_numbers<[1], [0], [0], [1], [0, 0, 1, 1], [], []>} : vector<4x16xf32>, vector<16x4xf32>, vector<4x4xf32> -> vector<4x4xf32>
    %c0_61 = arith.constant 0 : index
    %c0_62 = arith.constant 0 : index
    %c1_63 = arith.constant 1 : index
    %c1_64 = arith.constant 1 : index
    %c0_65 = arith.constant 0 : index
    %c0_66 = arith.constant 0 : index
    %41 = vector.load %arg5[%c0_61, %c0_62, %c1_63, %c1_64, %c0_65, %c0_66] : memref<1x1x4x4x4x4xf32, #tpu.memory_space<vmem>>, vector<1x1x1x1x4x4xf32>
    %42 = vector.shape_cast %41 : vector<1x1x1x1x4x4xf32> to vector<4x4xf32>
    %43 = vector.shape_cast %40 : vector<4x4xf32> to vector<1x1x1x1x4x4xf32>
    tpu.vector_store %arg5[%c0_61, %c0_62, %c1_63, %c1_64, %c0_65, %c0_66], %43 {strides = array<i32>} : memref<1x1x4x4x4x4xf32, #tpu.memory_space<vmem>>, vector<1x1x1x1x4x4xf32>,
    %c2_67 = arith.constant 2 : index
    %c0_68 = arith.constant 0 : index
    %c0_69 = arith.constant 0 : index
    %44 = vector.load %arg4[%c2_67, %c0_68, %c0_69] : memref<4x16x4xf32, #tpu.memory_space<vmem>>, vector<1x16x4xf32>
    %45 = vector.shape_cast %44 : vector<1x16x4xf32> to vector<16x4xf32>
    %cst_70 = arith.constant dense<0.000000e+00> : vector<4x4xf32>
    %46 = tpu.matmul %31, %45, %cst_70 {dimension_numbers = #tpu.dot_dimension_numbers<[1], [0], [0], [1], [0, 0, 1, 1], [], []>} : vector<4x16xf32>, vector<16x4xf32>, vector<4x4xf32> -> vector<4x4xf32>
    %c0_71 = arith.constant 0 : index
    %c0_72 = arith.constant 0 : index
    %c1_73 = arith.constant 1 : index
    %c2_74 = arith.constant 2 : index
    %c0_75 = arith.constant 0 : index
    %c0_76 = arith.constant 0 : index
    %47 = vector.load %arg5[%c0_71, %c0_72, %c1_73, %c2_74, %c0_75, %c0_76] : memref<1x1x4x4x4x4xf32, #tpu.memory_space<vmem>>, vector<1x1x1x1x4x4xf32>
    %48 = vector.shape_cast %47 : vector<1x1x1x1x4x4xf32> to vector<4x4xf32>
    %49 = vector.shape_cast %46 : vector<4x4xf32> to vector<1x1x1x1x4x4xf32>
    tpu.vector_store %arg5[%c0_71, %c0_72, %c1_73, %c2_74, %c0_75, %c0_76], %49 {strides = array<i32>} : memref<1x1x4x4x4x4xf32, #tpu.memory_space<vmem>>, vector<1x1x1x1x4x4xf32>,
    %c3_77 = arith.constant 3 : index
    %c0_78 = arith.constant 0 : index
    %c0_79 = arith.constant 0 : index
    %50 = vector.load %arg4[%c3_77, %c0_78, %c0_79] : memref<4x16x4xf32, #tpu.memory_space<vmem>>, vector<1x16x4xf32>
    %51 = vector.shape_cast %50 : vector<1x16x4xf32> to vector<16x4xf32>
    %cst_80 = arith.constant dense<0.000000e+00> : vector<4x4xf32>
    %52 = tpu.matmul %31, %51, %cst_80 {dimension_numbers = #tpu.dot_dimension_numbers<[1], [0], [0], [1], [0, 0, 1, 1], [], []>} : vector<4x16xf32>, vector<16x4xf32>, vector<4x4xf32> -> vector<4x4xf32>
    %c0_81 = arith.constant 0 : index
    %c0_82 = arith.constant 0 : index
    %c1_83 = arith.constant 1 : index
    %c3_84 = arith.constant 3 : index
    %c0_85 = arith.constant 0 : index
    %c0_86 = arith.constant 0 : index
    %53 = vector.load %arg5[%c0_81, %c0_82, %c1_83, %c3_84, %c0_85, %c0_86] : memref<1x1x4x4x4x4xf32, #tpu.memory_space<vmem>>, vector<1x1x1x1x4x4xf32>
    %54 = vector.shape_cast %53 : vector<1x1x1x1x4x4xf32> to vector<4x4xf32>
    %55 = vector.shape_cast %52 : vector<4x4xf32> to vector<1x1x1x1x4x4xf32>
    tpu.vector_store %arg5[%c0_81, %c0_82, %c1_83, %c3_84, %c0_85, %c0_86], %55 {strides = array<i32>} : memref<1x1x4x4x4x4xf32, #tpu.memory_space<vmem>>, vector<1x1x1x1x4x4xf32>,
    %c2_87 = arith.constant 2 : index
    %c0_88 = arith.constant 0 : index
    %c0_89 = arith.constant 0 : index
    %56 = vector.load %arg3[%c2_87, %c0_88, %c0_89] : memref<4x4x16xf32, #tpu.memory_space<vmem>>, vector<1x4x16xf32>
    %57 = vector.shape_cast %56 : vector<1x4x16xf32> to vector<4x16xf32>
    %cst_90 = arith.constant dense<0.000000e+00> : vector<4x16xf32>
    %58 = tpu.matmul %57, %1, %cst_90 {dimension_numbers = #tpu.dot_dimension_numbers<[1], [0], [0], [1], [0, 0, 1, 1], [], []>} : vector<4x16xf32>, vector<16x16xf32>, vector<4x16xf32> -> vector<4x16xf32>
    %c0_91 = arith.constant 0 : index
    %c0_92 = arith.constant 0 : index
    %c0_93 = arith.constant 0 : index
    %59 = vector.load %arg4[%c0_91, %c0_92, %c0_93] : memref<4x16x4xf32, #tpu.memory_space<vmem>>, vector<1x16x4xf32>
    %60 = vector.shape_cast %59 : vector<1x16x4xf32> to vector<16x4xf32>
    %cst_94 = arith.constant dense<0.000000e+00> : vector<4x4xf32>
    %61 = tpu.matmul %58, %60, %cst_94 {dimension_numbers = #tpu.dot_dimension_numbers<[1], [0], [0], [1], [0, 0, 1, 1], [], []>} : vector<4x16xf32>, vector<16x4xf32>, vector<4x4xf32> -> vector<4x4xf32>
    %c0_95 = arith.constant 0 : index
    %c0_96 = arith.constant 0 : index
    %c2_97 = arith.constant 2 : index
    %c0_98 = arith.constant 0 : index
    %c0_99 = arith.constant 0 : index
    %c0_100 = arith.constant 0 : index
    %62 = vector.load %arg5[%c0_95, %c0_96, %c2_97, %c0_98, %c0_99, %c0_100] : memref<1x1x4x4x4x4xf32, #tpu.memory_space<vmem>>, vector<1x1x1x1x4x4xf32>
    %63 = vector.shape_cast %62 : vector<1x1x1x1x4x4xf32> to vector<4x4xf32>
    %64 = vector.shape_cast %61 : vector<4x4xf32> to vector<1x1x1x1x4x4xf32>
    tpu.vector_store %arg5[%c0_95, %c0_96, %c2_97, %c0_98, %c0_99, %c0_100], %64 {strides = array<i32>} : memref<1x1x4x4x4x4xf32, #tpu.memory_space<vmem>>, vector<1x1x1x1x4x4xf32>,
    %c1_101 = arith.constant 1 : index
    %c0_102 = arith.constant 0 : index
    %c0_103 = arith.constant 0 : index
    %65 = vector.load %arg4[%c1_101, %c0_102, %c0_103] : memref<4x16x4xf32, #tpu.memory_space<vmem>>, vector<1x16x4xf32>
    %66 = vector.shape_cast %65 : vector<1x16x4xf32> to vector<16x4xf32>
    %cst_104 = arith.constant dense<0.000000e+00> : vector<4x4xf32>
    %67 = tpu.matmul %58, %66, %cst_104 {dimension_numbers = #tpu.dot_dimension_numbers<[1], [0], [0], [1], [0, 0, 1, 1], [], []>} : vector<4x16xf32>, vector<16x4xf32>, vector<4x4xf32> -> vector<4x4xf32>
    %c0_105 = arith.constant 0 : index
    %c0_106 = arith.constant 0 : index
    %c2_107 = arith.constant 2 : index
    %c1_108 = arith.constant 1 : index
    %c0_109 = arith.constant 0 : index
    %c0_110 = arith.constant 0 : index
    %68 = vector.load %arg5[%c0_105, %c0_106, %c2_107, %c1_108, %c0_109, %c0_110] : memref<1x1x4x4x4x4xf32, #tpu.memory_space<vmem>>, vector<1x1x1x1x4x4xf32>
    %69 = vector.shape_cast %68 : vector<1x1x1x1x4x4xf32> to vector<4x4xf32>
    %70 = vector.shape_cast %67 : vector<4x4xf32> to vector<1x1x1x1x4x4xf32>
    tpu.vector_store %arg5[%c0_105, %c0_106, %c2_107, %c1_108, %c0_109, %c0_110], %70 {strides = array<i32>} : memref<1x1x4x4x4x4xf32, #tpu.memory_space<vmem>>, vector<1x1x1x1x4x4xf32>,
    %c2_111 = arith.constant 2 : index
    %c0_112 = arith.constant 0 : index
    %c0_113 = arith.constant 0 : index
    %71 = vector.load %arg4[%c2_111, %c0_112, %c0_113] : memref<4x16x4xf32, #tpu.memory_space<vmem>>, vector<1x16x4xf32>
    %72 = vector.shape_cast %71 : vector<1x16x4xf32> to vector<16x4xf32>
    %cst_114 = arith.constant dense<0.000000e+00> : vector<4x4xf32>
    %73 = tpu.matmul %58, %72, %cst_114 {dimension_numbers = #tpu.dot_dimension_numbers<[1], [0], [0], [1], [0, 0, 1, 1], [], []>} : vector<4x16xf32>, vector<16x4xf32>, vector<4x4xf32> -> vector<4x4xf32>
    %c0_115 = arith.constant 0 : index
    %c0_116 = arith.constant 0 : index
    %c2_117 = arith.constant 2 : index
    %c2_118 = arith.constant 2 : index
    %c0_119 = arith.constant 0 : index
    %c0_120 = arith.constant 0 : index
    %74 = vector.load %arg5[%c0_115, %c0_116, %c2_117, %c2_118, %c0_119, %c0_120] : memref<1x1x4x4x4x4xf32, #tpu.memory_space<vmem>>, vector<1x1x1x1x4x4xf32>
    %75 = vector.shape_cast %74 : vector<1x1x1x1x4x4xf32> to vector<4x4xf32>
    %76 = vector.shape_cast %73 : vector<4x4xf32> to vector<1x1x1x1x4x4xf32>
    tpu.vector_store %arg5[%c0_115, %c0_116, %c2_117, %c2_118, %c0_119, %c0_120], %76 {strides = array<i32>} : memref<1x1x4x4x4x4xf32, #tpu.memory_space<vmem>>, vector<1x1x1x1x4x4xf32>,
    %c3_121 = arith.constant 3 : index
    %c0_122 = arith.constant 0 : index
    %c0_123 = arith.constant 0 : index
    %77 = vector.load %arg4[%c3_121, %c0_122, %c0_123] : memref<4x16x4xf32, #tpu.memory_space<vmem>>, vector<1x16x4xf32>
    %78 = vector.shape_cast %77 : vector<1x16x4xf32> to vector<16x4xf32>
    %cst_124 = arith.constant dense<0.000000e+00> : vector<4x4xf32>
    %79 = tpu.matmul %58, %78, %cst_124 {dimension_numbers = #tpu.dot_dimension_numbers<[1], [0], [0], [1], [0, 0, 1, 1], [], []>} : vector<4x16xf32>, vector<16x4xf32>, vector<4x4xf32> -> vector<4x4xf32>
    %c0_125 = arith.constant 0 : index
    %c0_126 = arith.constant 0 : index
    %c2_127 = arith.constant 2 : index
    %c3_128 = arith.constant 3 : index
    %c0_129 = arith.constant 0 : index
    %c0_130 = arith.constant 0 : index
    %80 = vector.load %arg5[%c0_125, %c0_126, %c2_127, %c3_128, %c0_129, %c0_130] : memref<1x1x4x4x4x4xf32, #tpu.memory_space<vmem>>, vector<1x1x1x1x4x4xf32>
    %81 = vector.shape_cast %80 : vector<1x1x1x1x4x4xf32> to vector<4x4xf32>
    %82 = vector.shape_cast %79 : vector<4x4xf32> to vector<1x1x1x1x4x4xf32>
    tpu.vector_store %arg5[%c0_125, %c0_126, %c2_127, %c3_128, %c0_129, %c0_130], %82 {strides = array<i32>} : memref<1x1x4x4x4x4xf32, #tpu.memory_space<vmem>>, vector<1x1x1x1x4x4xf32>,
    %c3_131 = arith.constant 3 : index
    %c0_132 = arith.constant 0 : index
    %c0_133 = arith.constant 0 : index
    %83 = vector.load %arg3[%c3_131, %c0_132, %c0_133] : memref<4x4x16xf32, #tpu.memory_space<vmem>>, vector<1x4x16xf32>
    %84 = vector.shape_cast %83 : vector<1x4x16xf32> to vector<4x16xf32>
    %cst_134 = arith.constant dense<0.000000e+00> : vector<4x16xf32>
    %85 = tpu.matmul %84, %1, %cst_134 {dimension_numbers = #tpu.dot_dimension_numbers<[1], [0], [0], [1], [0, 0, 1, 1], [], []>} : vector<4x16xf32>, vector<16x16xf32>, vector<4x16xf32> -> vector<4x16xf32>
    %c0_135 = arith.constant 0 : index
    %c0_136 = arith.constant 0 : index
    %c0_137 = arith.constant 0 : index
    %86 = vector.load %arg4[%c0_135, %c0_136, %c0_137] : memref<4x16x4xf32, #tpu.memory_space<vmem>>, vector<1x16x4xf32>
    %87 = vector.shape_cast %86 : vector<1x16x4xf32> to vector<16x4xf32>
    %cst_138 = arith.constant dense<0.000000e+00> : vector<4x4xf32>
    %88 = tpu.matmul %85, %87, %cst_138 {dimension_numbers = #tpu.dot_dimension_numbers<[1], [0], [0], [1], [0, 0, 1, 1], [], []>} : vector<4x16xf32>, vector<16x4xf32>, vector<4x4xf32> -> vector<4x4xf32>
    %c0_139 = arith.constant 0 : index
    %c0_140 = arith.constant 0 : index
    %c3_141 = arith.constant 3 : index
    %c0_142 = arith.constant 0 : index
    %c0_143 = arith.constant 0 : index
    %c0_144 = arith.constant 0 : index
    %89 = vector.load %arg5[%c0_139, %c0_140, %c3_141, %c0_142, %c0_143, %c0_144] : memref<1x1x4x4x4x4xf32, #tpu.memory_space<vmem>>, vector<1x1x1x1x4x4xf32>
    %90 = vector.shape_cast %89 : vector<1x1x1x1x4x4xf32> to vector<4x4xf32>
    %91 = vector.shape_cast %88 : vector<4x4xf32> to vector<1x1x1x1x4x4xf32>
    tpu.vector_store %arg5[%c0_139, %c0_140, %c3_141, %c0_142, %c0_143, %c0_144], %91 {strides = array<i32>} : memref<1x1x4x4x4x4xf32, #tpu.memory_space<vmem>>, vector<1x1x1x1x4x4xf32>,
    %c1_145 = arith.constant 1 : index
    %c0_146 = arith.constant 0 : index
    %c0_147 = arith.constant 0 : index
    %92 = vector.load %arg4[%c1_145, %c0_146, %c0_147] : memref<4x16x4xf32, #tpu.memory_space<vmem>>, vector<1x16x4xf32>
    %93 = vector.shape_cast %92 : vector<1x16x4xf32> to vector<16x4xf32>
    %cst_148 = arith.constant dense<0.000000e+00> : vector<4x4xf32>
    %94 = tpu.matmul %85, %93, %cst_148 {dimension_numbers = #tpu.dot_dimension_numbers<[1], [0], [0], [1], [0, 0, 1, 1], [], []>} : vector<4x16xf32>, vector<16x4xf32>, vector<4x4xf32> -> vector<4x4xf32>
    %c0_149 = arith.constant 0 : index
    %c0_150 = arith.constant 0 : index
    %c3_151 = arith.constant 3 : index
    %c1_152 = arith.constant 1 : index
    %c0_153 = arith.constant 0 : index
    %c0_154 = arith.constant 0 : index
    %95 = vector.load %arg5[%c0_149, %c0_150, %c3_151, %c1_152, %c0_153, %c0_154] : memref<1x1x4x4x4x4xf32, #tpu.memory_space<vmem>>, vector<1x1x1x1x4x4xf32>
    %96 = vector.shape_cast %95 : vector<1x1x1x1x4x4xf32> to vector<4x4xf32>
    %97 = vector.shape_cast %94 : vector<4x4xf32> to vector<1x1x1x1x4x4xf32>
    tpu.vector_store %arg5[%c0_149, %c0_150, %c3_151, %c1_152, %c0_153, %c0_154], %97 {strides = array<i32>} : memref<1x1x4x4x4x4xf32, #tpu.memory_space<vmem>>, vector<1x1x1x1x4x4xf32>,
    %c2_155 = arith.constant 2 : index
    %c0_156 = arith.constant 0 : index
    %c0_157 = arith.constant 0 : index
    %98 = vector.load %arg4[%c2_155, %c0_156, %c0_157] : memref<4x16x4xf32, #tpu.memory_space<vmem>>, vector<1x16x4xf32>
    %99 = vector.shape_cast %98 : vector<1x16x4xf32> to vector<16x4xf32>
    %cst_158 = arith.constant dense<0.000000e+00> : vector<4x4xf32>
    %100 = tpu.matmul %85, %99, %cst_158 {dimension_numbers = #tpu.dot_dimension_numbers<[1], [0], [0], [1], [0, 0, 1, 1], [], []>} : vector<4x16xf32>, vector<16x4xf32>, vector<4x4xf32> -> vector<4x4xf32>
    %c0_159 = arith.constant 0 : index
    %c0_160 = arith.constant 0 : index
    %c3_161 = arith.constant 3 : index
    %c2_162 = arith.constant 2 : index
    %c0_163 = arith.constant 0 : index
    %c0_164 = arith.constant 0 : index
    %101 = vector.load %arg5[%c0_159, %c0_160, %c3_161, %c2_162, %c0_163, %c0_164] : memref<1x1x4x4x4x4xf32, #tpu.memory_space<vmem>>, vector<1x1x1x1x4x4xf32>
    %102 = vector.shape_cast %101 : vector<1x1x1x1x4x4xf32> to vector<4x4xf32>
    %103 = vector.shape_cast %100 : vector<4x4xf32> to vector<1x1x1x1x4x4xf32>
    tpu.vector_store %arg5[%c0_159, %c0_160, %c3_161, %c2_162, %c0_163, %c0_164], %103 {strides = array<i32>} : memref<1x1x4x4x4x4xf32, #tpu.memory_space<vmem>>, vector<1x1x1x1x4x4xf32>,
    %c3_165 = arith.constant 3 : index
    %c0_166 = arith.constant 0 : index
    %c0_167 = arith.constant 0 : index
    %104 = vector.load %arg4[%c3_165, %c0_166, %c0_167] : memref<4x16x4xf32, #tpu.memory_space<vmem>>, vector<1x16x4xf32>
    %105 = vector.shape_cast %104 : vector<1x16x4xf32> to vector<16x4xf32>
    %cst_168 = arith.constant dense<0.000000e+00> : vector<4x4xf32>
    %106 = tpu.matmul %85, %105, %cst_168 {dimension_numbers = #tpu.dot_dimension_numbers<[1], [0], [0], [1], [0, 0, 1, 1], [], []>} : vector<4x16xf32>, vector<16x4xf32>, vector<4x4xf32> -> vector<4x4xf32>
    %c0_169 = arith.constant 0 : index
    %c0_170 = arith.constant 0 : index
    %c3_171 = arith.constant 3 : index
    %c3_172 = arith.constant 3 : index
    %c0_173 = arith.constant 0 : index
    %c0_174 = arith.constant 0 : index
    %107 = vector.load %arg5[%c0_169, %c0_170, %c3_171, %c3_172, %c0_173, %c0_174] : memref<1x1x4x4x4x4xf32, #tpu.memory_space<vmem>>, vector<1x1x1x1x4x4xf32>
    %108 = vector.shape_cast %107 : vector<1x1x1x1x4x4xf32> to vector<4x4xf32>
    %109 = vector.shape_cast %106 : vector<4x4xf32> to vector<1x1x1x1x4x4xf32>
    tpu.vector_store %arg5[%c0_169, %c0_170, %c3_171, %c3_172, %c0_173, %c0_174], %109 {strides = array<i32>} : memref<1x1x4x4x4x4xf32, #tpu.memory_space<vmem>>, vector<1x1x1x1x4x4xf32>,
    return
  }
  func.func @transform_0(%arg0: i32, %arg1: i32) -> (i32, i32, i32, i32) {
    %c0_i32 = arith.constant 0 : i32
    %c0_i32_0 = arith.constant 0 : i32
    %c0_i32_1 = arith.constant 0 : i32
    return %arg0, %arg1, %c0_i32, %c0_i32_0 : i32, i32, i32, i32
  }
  func.func @transform_1(%arg0: i32, %arg1: i32) -> (i32, i32, i32) {
    %c0_i32 = arith.constant 0 : i32
    %c0_i32_0 = arith.constant 0 : i32
    %c0_i32_1 = arith.constant 0 : i32
    %c0_i32_2 = arith.constant 0 : i32
    return %c0_i32, %c0_i32_0, %c0_i32_1 : i32, i32, i32
  }
  func.func @transform_2(%arg0: i32, %arg1: i32) -> (i32, i32, i32) {
    %c0_i32 = arith.constant 0 : i32
    %c0_i32_0 = arith.constant 0 : i32
    %c0_i32_1 = arith.constant 0 : i32
    %c0_i32_2 = arith.constant 0 : i32
    return %c0_i32, %c0_i32_0, %c0_i32_1 : i32, i32, i32
  }
  func.func @transform_3(%arg0: i32, %arg1: i32) -> (i32, i32, i32, i32, i32, i32) {
    %c0_i32 = arith.constant 0 : i32
    %c0_i32_0 = arith.constant 0 : i32
    %c0_i32_1 = arith.constant 0 : i32
    %c0_i32_2 = arith.constant 0 : i32
    %c0_i32_3 = arith.constant 0 : i32
    return %arg0, %arg1, %c0_i32, %c0_i32_0, %c0_i32_1, %c0_i32_2 : i32, i32, i32, i32, i32, i32
  }
}

</mosaic_0001>

<bundles_post_ra>
// kernel: std_pallas.1
= control target key start
LH: loop header
LB: loop body
LE: loop exit
PB: predicated region body
PF: predicated region fallthrough
CT: control target
= control target key end

     0   :  { %s1460_s0 = inlined_call_operand.hbm [shape: f32[2,4,16,16], index: 0, kind: input, shape index: {}]   ;;  %s1461_s1 = inlined_call_operand.hbm [shape: f32[4,4,16], index: 1, kind: input, shape index: {}]   ;;  %s1462_s2 = inlined_call_operand.hbm [shape: f32[4,16,4], index: 2, kind: input, shape index: {}]   ;;  %s1463_s3 = inlined_call_operand.vmem [shape: f32[2,4,4,4,4,4], index: 3, kind: output, shape index: {}]  }
   0x1   :  { %1468 = sst [smem:[#allocation11_spill]] %s1461_s1 }
   0x2   :  { %1469 = sst [smem:[#allocation12_spill]] %s1462_s2 }
   0x3   :  { %8 = vsyncpa [#allocation3], 0 }
   0x4   :  { %10 = vsyncpa [#allocation3 + $0x1], 0 }
   0x5   :  { %11 = vsyncpa [#allocation5], 0  ;;  %s1211_s12 = smov 0   ;;  %s1213_s13 = smov 0  }
   0x6   :  { %s1215_s14 = smov 0   ;;  %s1217_s15 = smov 0  }
   0x7   :  { %s1219_s16 = smov 0   ;;  %s1221_s17 = smov 0  }
   0x8   :  { %s1223_s18 = smov 0   ;;  %s1225_s19 = smov 0  }
   0x9 LB: > { %s873_s20 = sadd.s32 4294967295, %s1183_s19   ;;  %p51_p0 = scmp.ne.s32.totalorder %s1159_s13, %s1155_s12  ;;  %s1183_s19 = sphi %s1225_s19, %s17_s19   ;;  %s1179_s18 = sphi %s1223_s18, %s1488_s18   ;;  %s1175_s17 = sphi %s1221_s17, %s1487_s17   ;;  %s1171_s16 = sphi %s1219_s16, %s1486_s16   ;;  %s1167_s15 = sphi %s1217_s15, %s1485_s15   ;;  %s1163_s14 = sphi %s1215_s14, %s1484_s14   ;;  %s1159_s13 = sphi %s1213_s13, %s1483_s13   ;;  %s1155_s12 = sphi %s1211_s12, %s1482_s12  }
   0xa   : > { %p1251_p1 = scmp.eq.s32.totalorder %s873_s20, 0  ;;  %p875_p2 = scmp.ge.s32.totalorder %s1183_s19, 1 }
   0xb   : > { %p132_p3 = scmp.lt.s32.totalorder %s1183_s19, 9  ;;  %s1472_s1 = sld [smem:[#allocation11_spill]] }
   0xc   : > { %p1259_p4 = por %p1251_p1, %p51_p0  ;;  %s1185_s27 = smov [#allocation4]  }
   0xd   : > { %p1266_p5 = pnand %p875_p2, %p132_p3  ;;  %s145_s28 = sshll.u32 %s1185_s27, 4  ;;  %s146_s28 = int_to_ptr.vmem [resolvable:$true] %s145_s28 }
   0xe   : > { %s1474_s2 = sld [smem:[#allocation12_spill]]  ;;  %s1186_s5 = smov 64  }
   0xf   : > { %p937_p6 = pneg %p1266_p5  ;;  %s1187_s6 = smov 4  }
  0x10   : > { %s1188_s7 = smov [#allocation6]   ;;  %s1464_s9 = smov 128  }
  0x11   : > { %s143_s25 = sshll.u32 %s1472_s1, 4  ;;  %p938_p7 = pnand %p937_p6, %p1251_p1  ;;  %s144_s25 = int_to_ptr.hbm [resolvable:$true] %s143_s25 }
  0x12   : > { %s159_s8 = sshll.u32 %s1188_s7, 4  ;;  %s1465_s10 = smov 8   ;;  %s160_s8 = int_to_ptr.vmem [resolvable:$true] %s159_s8 }
  0x13   : > { %940 = dma.hbm_to_vmem [thread:$0]  (!%p938_p7), %s144_s25, 256, %s146_s28, [#allocation5], %s1186_s5, %s1186_s5, %s1187_s6  }
  0x14   : > { %s157_s4 = sshll.u32 %s1474_s2, 4  ;;  %s26_s11 = sadd.s32 1, %s1175_s17  ;;  %s158_s4 = int_to_ptr.hbm [resolvable:$true] %s157_s4 }
  0x15   : > { %943 = dma.hbm_to_vmem [thread:$0]  (!%p938_p7), %s158_s4, 1024, %s160_s8, [#allocation5], %s1464_s9, %s1464_s9, %s1465_s10  }
  0x16   : > { %s29_s12 = sadd.s32 1, %s1179_s18  ;;  %p27_p8 = scmp.ge.s32.totalorder %s26_s11, 4 }
  0x17   : > { %s38_s20 = sadd.s32 1, %s1163_s14  ;;  %p45_p9 = scmp.ne.s32.totalorder %s1163_s14, %s1159_s13 }
  0x18   : > { %p46_p10 = scmp.eq.s32.totalorder %s1183_s19, 0  ;;  %s1490_s11 = smov (%p27_p8, %s26_s11), 0 }
  0x19   : > { %1475 = sst [smem:[#allocation9_spill]] %s1490_s11  ;;  %s1492_s12 = smov (!%p27_p8, %s29_s12), %s1179_s18 }
  0x1a   : > { %s34_s23 = ssub.s32 %s1175_s17, %s1490_s11  ;;  %p1291_p11 = por %p46_p10, %p45_p9 }
  0x1b   : > { %p31_p12 = scmp.ge.s32.totalorder %s1492_s12, 2  ;;  %p950_p13 = scmp.lt.s32.totalorder %s1183_s19, 8 }
  0x1c   : > { %s173_s25 = sand.u32 1, %s1163_s14   ;;  %s880_s27 = sshll.u32 %s1175_s17, 1 }
  0x1d   : > { %s1494_s12 = smov (%p31_p12, %s1492_s12), 0  ;;  %s879_s28 = sshll.u32 %s173_s25, 4 }
  0x1e   : > { %1477 = sst [smem:[#allocation10_spill]] %s1494_s12  ;;  %s33_s29 = ssub.s32 %s1179_s18, %s1494_s12 }
  0x1f   : > { %s35_s30 = sor.u32 %s34_s23, %s33_s29  ;;  %s881_s4 = sshll.u32 %s1179_s18, 3 }
  0x20   : > { %p36_p0 = scmp.eq.s32.totalorder %s35_s30, 0  ;;  %s182_s5 = sadd.s32 %s881_s4, %s880_s27 }
  0x21   : > { %s882_s6 = sshll.u32 %s182_s5, 3  ;;  %s177_s7 = scalar_lea.vmem [#allocation2], %s879_s28 }
  0x22   : > { %s187_s8 = sshll.u32 %s177_s7, 4  ;;  %s184_s2 = scalar_lea.hbm %s1460_s0, %s882_s6  ;;  %s188_s8 = int_to_ptr.vmem [resolvable:$true] %s187_s8 }
  0x23   : > { %s1304_s9 = scalar_select %p36_p0, %s1163_s14, %s38_s20  }
  0x24   : > { %s185_s11 = sshll.u32 %s184_s2, 4  ;;  %p945_p2 = pnand %p950_p13, %p1291_p11  ;;  %s186_s11 = int_to_ptr.hbm [resolvable:$true] %s185_s11 }
  0x25   : > { %s174_s12 = scalar_lea.sflag [#allocation3], %s173_s25  ;;  %s1478_s23 = smov 8  }
  0x26   : > { %s1479_s29 = smov 128   ;;  %199 = sbr.rel (%p1266_p5) target bundleno = 725 (0x2d5), region = 32 }
  0x27   : > { %947 = dma.hbm_to_vmem [thread:$0]  (!%p945_p2), %s186_s11, 256, %s188_s8, %s174_s12, %s1479_s29, %s1479_s29, %s1478_s23  }
  0x28   : > { %s201_s20 = sand.u32 (!%p1266_p5), 1, %s1159_s13  }
  0x29   : > { %s884_s27 = sshll.u32 (!%p1266_p5), %s201_s20, 4  ;;  %s202_s1 = scalar_lea.sflag (!%p1266_p5), [#allocation3], %s201_s20 }
  0x2a   : > { %s205_s10 = scalar_lea.vmem (!%p1266_p5), [#allocation2], %s884_s27 }
  0x2b   : > { %1146 = dma.done.wait (%p1259_p4), %s202_s1, 256  }
  0x2c   : > { %1148 = vsyncadd (%p1259_p4), %s202_s1, 4294967040 }
  0x2d   : > { %1150 = dma.done.wait (%p1251_p1), [#allocation5], 1280  }
  0x2e   : > { %1152 = vsyncadd (%p1251_p1), [#allocation5], 4294966016  ;;  %v1327_v0 = vld [vmem:[%s205_s10 + $0x8] sm:$0xff]  ;;  %v1329_v1 = vld [vmem:[%s205_s10] sm:$0xff]  ;;  %vm255_vm0 = vcmask 130048   ;;  %p243_p1 = scmp.lt.s32.totalorder %s1171_s16, 1 }
  0x2f   : > { %v254_v2 = vld [vmem:[#allocation4] sm:$0xf]  ;;  %273 = vmatpush.msra.mxu0 %v1327_v0  ;;  %v1332_v3 = vld [vmem:[#allocation6 + $0x8] sm:$0xff]  ;;  %v1334_v4 = vld [vmem:[#allocation6 + $0x18] sm:$0xff]  ;;  %p245_p3 = scmp.lt.s32.totalorder %s1167_s15, 3  ;;  %vm304_vm1 = vcmask 27648  }
  0x30   : > { %v1336_v5 = vld [vmem:[#allocation6 + $0x28] sm:$0xff]  ;;  %298 = vmatpush.msra.mxu1 %v1332_v3  ;;  %323 = vmatpush.msra.mxu2 %v1334_v4  ;;  %v1340_v6 = vld [vmem:[#allocation6 + $0x38] sm:$0xff]  ;;  %v279_v7 = vld [vmem:[#allocation6] sm:$0xff]  ;;  %s1496_s16 = smov (!%p243_p1, %s1171_s16), 1 }
  0x31   : > { %274 = vmatpush.msra.mxu0 %v1329_v1  ;;  %348 = vmatpush.msra.mxu3 %v1336_v5  ;;  %v307_v8 = vld [vmem:[#allocation6 + $0x10] sm:$0xff]  ;;  %v1346_v9 = vld [vmem:[#allocation6 + $0x20] sm:$0xff]  ;;  %s1498_s15 = smov (!%p245_p3, %s1167_s15), 3  ;;  %s888_s21 = sshll.u32 %s1496_s16, 6  ;;  %v506_v18 = vld [vmem:[#allocation4 + $0x8] sm:$0xf] }
  0x32   : > { %890 = vmatmul.msk.f32.vlgmr.msra.gmra.mxu0 %vm255_vm0, %v254_v2  ;;  %299 = vmatpush.msra.mxu1 %v279_v7  ;;  %v1348_v10 = vld [vmem:[#allocation6 + $0x30] sm:$0xff]  ;;  %s887_s2 = sshll.u32 %s1498_s15, 4  ;;  %v630_v24 = vld [vmem:[#allocation4 + $0xc] sm:$0xf] }
  0x33   : > { %373 = vmatpush.msrb.mxu0 %v1340_v6  ;;  %324 = vmatpush.msra.mxu2 %v307_v8  ;;  %v382_v12 = vld [vmem:[#allocation4 + $0x4] sm:$0xf]  ;;  %s249_s22 = sadd.s32 %s888_s21, %s887_s2 }
  0x34   : > { %349 = vmatpush.msra.mxu3 %v1346_v9  ;;  %400 = vmatpush.msrb.mxu1 %v1327_v0  ;;  %s889_s26 = sshll.u32 %s249_s22, 2 }
  0x35   : > { %374 = vmatpush.msrb.mxu0 %v1348_v10  ;;  %425 = vmatpush.msrb.mxu2 %v1332_v3  ;;  %s1378_s24 = scalar_lea.vmem %s1463_s3, %s889_s26 }
  0x36   : > { %449 = vmatpush.msrb.mxu3 %v1334_v4  ;;  %401 = vmatpush.msrb.mxu1 %v1329_v1 }
  0x37   : > { %473 = vmatpush.msra.mxu0 %v1336_v5  ;;  %426 = vmatpush.msrb.mxu2 %v279_v7 }
  0x38   : > { %450 = vmatpush.msrb.mxu3 %v307_v8 }
  0x39   : > { %474 = vmatpush.msra.mxu0 %v1346_v9 }
  0xaf   : > { %v276_v11 = vpop.f32.mrf.mxu0 }
  0xb0   : > { %891 = vmatmul.msk.f32.vlgmr.msra.gmra.mxu1 %vm255_vm0, %v276_v11  ;;  %892 = vmatmul.msk.f32.vlgmr.msra.gmra.mxu2 %vm255_vm0, %v276_v11 }
  0xb1   : > { %894 = vmatmul.msk.f32.vlgmr.msra.gmra.mxu3 %vm255_vm0, %v276_v11  ;;  %896 = vmatmul.msk.f32.vlgmr.msrb.gmra.mxu0 %vm255_vm0, %v276_v11 }
  0xb2   : > { %497 = vmatpush.msra.mxu1 %v1340_v6  ;;  %524 = vmatpush.msra.mxu2 %v1327_v0 }
  0xb3   : > { %549 = vmatpush.msra.mxu3 %v1332_v3  ;;  %573 = vmatpush.msrb.mxu0 %v1334_v4 }
  0xb4   : > { %498 = vmatpush.msra.mxu1 %v1348_v10  ;;  %525 = vmatpush.msra.mxu2 %v1329_v1 }
  0xb5   : > { %550 = vmatpush.msra.mxu3 %v279_v7  ;;  %574 = vmatpush.msrb.mxu0 %v307_v8 }
  0xb8   : > { %898 = vmatmul.msk.f32.vlgmr.msrb.gmra.mxu1 %vm255_vm0, %v382_v12 }
  0xb9   : > { %597 = vmatpush.msrb.mxu1 %v1336_v5 }
  0xbb   : > { %598 = vmatpush.msrb.mxu1 %v1346_v9 }
 0x12d   : > { %v301_v13 = vpop.f32.mrf.mxu1 }
 0x12e   : > { %305 = vst.msk [vmem:[%s1378_s24] sm:$0xf] %vm304_vm1, %v301_v13  ;;  %v376_v14 = vpop.f32.mrf.mxu0 }
 0x12f   : > { %897 = vst.msk [vmem:[%s1378_s24 + $0xc] sm:$0xf] %vm304_vm1, %v376_v14 }
 0x133   : > { %v326_v15 = vpop.f32.mrf.mxu2 }
 0x134   : > { %893 = vst.msk [vmem:[%s1378_s24 + $0x4] sm:$0xf] %vm304_vm1, %v326_v15  ;;  %v351_v16 = vpop.f32.mrf.mxu3 }
 0x135   : > { %895 = vst.msk [vmem:[%s1378_s24 + $0x8] sm:$0xf] %vm304_vm1, %v351_v16  ;;  %v403_v17 = vpop.f32.mrf.mxu1 }
 0x136   : > { %899 = vmatmul.msk.f32.vlgmr.msrb.gmra.mxu2 %vm255_vm0, %v403_v17  ;;  %901 = vmatmul.msk.f32.vlgmr.msrb.gmra.mxu3 %vm255_vm0, %v403_v17 }
 0x137   : > { %903 = vmatmul.msk.f32.vlgmr.msra.gmra.mxu0 %vm255_vm0, %v403_v17  ;;  %905 = vmatmul.msk.f32.vlgmr.msra.gmra.mxu1 %vm255_vm0, %v403_v17 }
 0x138   : > { %621 = vmatpush.msrb.mxu2 %v1340_v6  ;;  %648 = vmatpush.msrb.mxu3 %v1327_v0 }
 0x139   : > { %673 = vmatpush.msra.mxu0 %v1332_v3  ;;  %697 = vmatpush.msra.mxu1 %v1334_v4 }
 0x13a   : > { %622 = vmatpush.msrb.mxu2 %v1348_v10  ;;  %649 = vmatpush.msrb.mxu3 %v1329_v1 }
 0x13b   : > { %674 = vmatpush.msra.mxu0 %v279_v7  ;;  %698 = vmatpush.msra.mxu1 %v307_v8 }
 0x13e   : > { %907 = vmatmul.msk.f32.vlgmr.msra.gmra.mxu2 %vm255_vm0, %v506_v18 }
 0x13f   : > { %721 = vmatpush.msra.mxu2 %v1336_v5 }
 0x141   : > { %722 = vmatpush.msra.mxu2 %v1346_v9 }
 0x1b4   : > { %v476_v19 = vpop.f32.mrf.mxu0  ;;  %v500_v20 = vpop.f32.mrf.mxu1 }
 0x1b5   : > { %904 = vst.msk [vmem:[%s1378_s24 + $0x18] sm:$0xf] %vm304_vm1, %v476_v19 }
 0x1b6   : > { %906 = vst.msk [vmem:[%s1378_s24 + $0x1c] sm:$0xf] %vm304_vm1, %v500_v20 }
 0x1b9   : > { %v428_v21 = vpop.f32.mrf.mxu2  ;;  %v452_v22 = vpop.f32.mrf.mxu3 }
 0x1ba   : > { %900 = vst.msk [vmem:[%s1378_s24 + $0x10] sm:$0xf] %vm304_vm1, %v428_v21 }
 0x1bb   : > { %902 = vst.msk [vmem:[%s1378_s24 + $0x14] sm:$0xf] %vm304_vm1, %v452_v22 }
 0x1c1   : > { %v527_v23 = vpop.f32.mrf.mxu2 }
 0x1c2   : > { %908 = vmatmul.msk.f32.vlgmr.msra.gmra.mxu3 %vm255_vm0, %v527_v23  ;;  %910 = vmatmul.msk.f32.vlgmr.msrb.gmra.mxu0 %vm255_vm0, %v527_v23 }
 0x1c3   : > { %912 = vmatmul.msk.f32.vlgmr.msrb.gmra.mxu1 %vm255_vm0, %v527_v23  ;;  %914 = vmatmul.msk.f32.vlgmr.msrb.gmra.mxu2 %vm255_vm0, %v527_v23 }
 0x1c4   : > { %745 = vmatpush.msra.mxu3 %v1340_v6 }
 0x1c6   : > { %746 = vmatpush.msra.mxu3 %v1348_v10 }
 0x1ca   : > { %916 = vmatmul.msk.f32.vlgmr.msrb.gmra.mxu3 %vm255_vm0, %v630_v24 }
 0x23f   : > { %v576_v25 = vpop.f32.mrf.mxu0 }
 0x240   : > { %911 = vst.msk [vmem:[%s1378_s24 + $0x24] sm:$0xf] %vm304_vm1, %v576_v25  ;;  %v600_v26 = vpop.f32.mrf.mxu1 }
 0x241   : > { %913 = vst.msk [vmem:[%s1378_s24 + $0x28] sm:$0xf] %vm304_vm1, %v600_v26 }
 0x245   : > { %v552_v27 = vpop.f32.mrf.mxu3 }
 0x246   : > { %909 = vst.msk [vmem:[%s1378_s24 + $0x20] sm:$0xf] %vm304_vm1, %v552_v27  ;;  %v624_v28 = vpop.f32.mrf.mxu2 }
 0x247   : > { %915 = vst.msk [vmem:[%s1378_s24 + $0x2c] sm:$0xf] %vm304_vm1, %v624_v28 }
 0x24d   : > { %v651_v29 = vpop.f32.mrf.mxu3 }
 0x24e   : > { %917 = vmatmul.msk.f32.vlgmr.msra.gmra.mxu0 %vm255_vm0, %v651_v29  ;;  %919 = vmatmul.msk.f32.vlgmr.msra.gmra.mxu1 %vm255_vm0, %v651_v29 }
 0x24f   : > { %921 = vmatmul.msk.f32.vlgmr.msra.gmra.mxu2 %vm255_vm0, %v651_v29  ;;  %923 = vmatmul.msk.f32.vlgmr.msra.gmra.mxu3 %vm255_vm0, %v651_v29 }
 0x2cb   : > { %v676_v30 = vpop.f32.mrf.mxu0  ;;  %v700_v31 = vpop.f32.mrf.mxu1 }
 0x2cc   : > { %918 = vst.msk [vmem:[%s1378_s24 + $0x30] sm:$0xf] %vm304_vm1, %v676_v30 }
 0x2cd   : > { %920 = vst.msk [vmem:[%s1378_s24 + $0x34] sm:$0xf] %vm304_vm1, %v700_v31 }
 0x2d2   : > { %v724_v32 = vpop.f32.mrf.mxu2  ;;  %v748_v33 = vpop.f32.mrf.mxu3 }
 0x2d3   : > { %922 = vst.msk [vmem:[%s1378_s24 + $0x38] sm:$0xf] %vm304_vm1, %v724_v32 }
 0x2d4   : > { %924 = vst.msk [vmem:[%s1378_s24 + $0x3c] sm:$0xf] %vm304_vm1, %v748_v33 }
 0x2d5 PF: > { %s17_s19 = sadd.s32 1, %s1183_s19   ;;  %s1480_s25 = sld [smem:[#allocation9_spill]] }
 0x2d6   : > { %p14_p4 = scmp.ge.s32.totalorder %s17_s19, 10   ;;  %s1481_s28 = sld [smem:[#allocation10_spill]] }
 0x2d7   : > { %s1482_s12 = smov %s1159_s13  ;;  %s1483_s13 = smov %s1163_s14 }
 0x2d8   : > { %s1484_s14 = smov %s1304_s9  ;;  %s1485_s15 = smov %s1175_s17 }
 0x2d9   : > { %s1486_s16 = smov %s1179_s18  ;;  %16 = sbr.rel (!%p14_p4) target bundleno = 9 (0x9), region = 101 }
 0x2db   : > { %s1487_s17 = smov %s1480_s25 }
 0x2dc   : > { %s1488_s18 = smov %s1481_s28 }
 0x2de   :  { %782 = vsyncpa [#allocation3], 1 }
 0x2df   :  { %784 = vsyncpa [#allocation3 + $0x1], 1 }
 0x2e0   :  { %785 = vsyncpa [#allocation5], 1 }

</bundles_post_ra>
